<compile_context>
chip_gen: v6e
topology: v6e:2x2x1
jax: 0.10.0
libtpu: 0.0.40
codegen_flags: <defaults>
</compile_context>

<pallas_src>
import functools

import jax
import jax.numpy as jnp
from jax.experimental import pallas as pl
from jax.experimental.pallas import tpu as pltpu

_MIB = 1024 * 1024


def _round_up(x: int, m: int) -> int:
    return (x + m - 1) // m * m


def _cdiv(a: int, b: int) -> int:
    return (a + b - 1) // b


def _mm_kernel_acc_in_output(a_ref, b_ref, o_ref):
    """float32 output: accumulate directly in the resident output block."""
    k = pl.program_id(2)
    prod = jnp.dot(a_ref[...], b_ref[...], preferred_element_type=jnp.float32)

    @pl.when(k == 0)
    def _():
        o_ref[...] = prod          # direct store: no zero-init + add on step 0

    @pl.when(k > 0)
    def _():
        o_ref[...] += prod


def _mm_kernel_acc_in_scratch(a_ref, b_ref, o_ref, acc_ref):
    """narrow output (bf16/f16): accumulate in f32 VMEM scratch, cast at the end."""
    k = pl.program_id(2)
    prod = jnp.dot(a_ref[...], b_ref[...], preferred_element_type=jnp.float32)

    @pl.when(k == 0)
    def _():
        acc_ref[...] = prod

    @pl.when(k > 0)
    def _():
        acc_ref[...] += prod

    @pl.when(k == pl.num_programs(2) - 1)
    def _():
        o_ref[...] = acc_ref[...].astype(o_ref.dtype)


@functools.partial(jax.jit, static_argnames=("tm", "tn", "tk"))
def mm(a: jax.Array, b: jax.Array, *, tm=None, tn=None, tk=None):
    """aten.mm.default: (M, K) @ (K, N) -> (M, N)."""
    assert a.ndim == 2 and b.ndim == 2, "mm requires 2-D inputs"
    M, K = a.shape
    K2, N = b.shape
    assert K == K2, "inner dimensions must match"

    out_dtype = jnp.promote_types(a.dtype, b.dtype)
    if out_dtype not in (jnp.float32, jnp.bfloat16, jnp.float16):
        # TODO(synk): integer / float64 mm has no MXU path on TPU; fall back to
        # the XLA dot rather than silently computing in float and rounding.
        return jnp.dot(a, b).astype(out_dtype)

    if M == 0 or N == 0 or K == 0:
        return jnp.zeros((M, N), out_dtype)

    # Cast both operands to the common dtype so the MXU sees a homogeneous dot.
    a = a.astype(out_dtype)
    b = b.astype(out_dtype)

    item = out_dtype.itemsize
    sub_align = 16 if item == 2 else 8

    # --- Tile selection ---------------------------------------------------
    # Big output blocks (HBM reuse ~ tm*tn/(tm+tn)), modest tk.
    if tm is None:
        tm = 1536 if item == 2 else 1024
    if tn is None:
        tn = 1536 if item == 2 else 1024
    if tk is None:
        tk = 512

    # Clamp to the problem size.  Lane dims (tk in A, tn in B/C) must stay
    # 128-multiples; sublane dims (tm; tk in B) only need 8/16 alignment.
    tm = max(sub_align, min(tm, _round_up(M, sub_align)))
    tn = max(128, min(tn, _round_up(N, 128)))
    tk = max(128, min(tk, _round_up(K, 128)))

    # Megacore occupancy guard: v7x shards the "parallel" grid axes across its
    # 2 TensorCores — make sure there are at least 2 output blocks.
    if _cdiv(M, tm) * _cdiv(N, tn) < 2:
        if tn >= 256 and tn % 256 == 0:
            tn //= 2
        elif tm >= 2 * sub_align and tm % (2 * sub_align) == 0:
            tm //= 2

    # Only K needs zero padding (garbage along K corrupts every output element).
    # M/N edge blocks are handled by Pallas partial tiles: out-of-range rows/cols
    # only feed output elements that are masked on the final store.
    Kp = _round_up(K, tk)
    a_p = a if Kp == K else jnp.pad(a, ((0, 0), (0, Kp - K)))
    b_p = b if Kp == K else jnp.pad(b, ((0, Kp - K), (0, 0)))

    grid = (_cdiv(M, tm), _cdiv(N, tn), Kp // tk)

    accumulate_in_output = out_dtype == jnp.float32
    if accumulate_in_output:
        kernel = _mm_kernel_acc_in_output
        scratch_shapes = []
        scratch_bytes = 0
    else:
        kernel = _mm_kernel_acc_in_scratch
        scratch_shapes = [pltpu.VMEM((tm, tn), jnp.float32)]
        scratch_bytes = tm * tn * 4

    # VMEM budget from the actual working set (double-buffered inputs + output,
    # plus scratch) with headroom, clamped to be safe on v7x (64 MiB physical).
    working = 2 * (tm * tk + tk * tn) * item + 2 * tm * tn * item + scratch_bytes
    vmem_limit = int(min(max(working + 16 * _MIB, 32 * _MIB), 48 * _MIB))

    # Tiled HBM traffic: A panel re-read once per N-tile, B once per M-tile.
    cost = pl.CostEstimate(
        flops=2 * M * N * K,
        transcendentals=0,
        bytes_accessed=int(
            grid[1] * M * Kp * item + grid[0] * Kp * N * item + M * N * item
        ),
    )

    # TODO(synk): f32 x f32 uses the default Mosaic MXU matmul precision; expose
    # a precision knob if bitwise parity with torch.mm fp32 is ever required.
    # NOTE: if profiling shows exposed DMA on v5e at large tk, sweep
    # pipeline_mode=pl.Buffered(3) on the K-streaming B spec.
    return pl.pallas_call(
        kernel,
        out_shape=jax.ShapeDtypeStruct((M, N), out_dtype),
        grid_spec=pltpu.PrefetchScalarGridSpec(
            num_scalar_prefetch=0,
            grid=grid,
            in_specs=[
                pl.BlockSpec((tm, tk), lambda i, j, k: (i, k)),
                pl.BlockSpec((tk, tn), lambda i, j, k: (k, j)),
            ],
            out_specs=pl.BlockSpec((tm, tn), lambda i, j, k: (i, j)),
            scratch_shapes=scratch_shapes,
        ),
        compiler_params=pltpu.CompilerParams(
            dimension_semantics=("parallel", "parallel", "arbitrary"),
            vmem_limit_bytes=vmem_limit,
        ),
        cost_estimate=cost,
    )(a_p, b_p)


def _check(out, a, b, name, tol=1e-2):
    ref = jnp.dot(
        a.astype(jnp.float32),
        b.astype(jnp.float32),
        precision=jax.lax.Precision.HIGHEST,
    )
    assert out.shape == ref.shape, (name, out.shape, ref.shape)
    err = jnp.max(jnp.abs(out.astype(jnp.float32) - ref))
    scale = jnp.max(jnp.abs(ref)) + 1e-6
    rel = float(err / scale)
    assert rel < tol, f"{name}: relative error too large: {rel}"


if __name__ == "__main__":
    key = jax.random.PRNGKey(0)
    k1, k2, k3, k4, k5, k6, k7, k8 = jax.random.split(key, 8)

    # 1) Small, tile-aligned shape (K <= tk -> single reduction step).
    M, K, N = 128, 256, 128
    a = jax.random.normal(k1, (M, K), dtype=jnp.float32)
    b = jax.random.normal(k2, (K, N), dtype=jnp.float32)
    out = mm(a, b)
    jax.block_until_ready(out)
    assert out.dtype == jnp.float32
    _check(out, a, b, "aligned_small")

    # 2) Ragged shape (exercises masked M/N edge tiles + K zero-padding).
    M, K, N = 200, 300, 136
    a = jax.random.normal(k3, (M, K), dtype=jnp.float32)
    b = jax.random.normal(k4, (K, N), dtype=jnp.float32)
    out = mm(a, b)
    jax.block_until_ready(out)
    _check(out, a, b, "ragged")

    # 3) Multi-step K reduction (resident-output f32 accumulation).
    M, K, N = 256, 2048, 256
    a = jax.random.normal(k5, (M, K), dtype=jnp.float32)
    b = jax.random.normal(k6, (K, N), dtype=jnp.float32)
    out = mm(a, b)
    jax.block_until_ready(out)
    _check(out, a, b, "multi_k")

    # 4) bf16 inputs (exercises the f32-scratch + final-cast path).
    M, K, N = 256, 512, 384
    a = jax.random.normal(k7, (M, K), dtype=jnp.bfloat16)
    b = jax.random.normal(k8, (K, N), dtype=jnp.bfloat16)
    out = mm(a, b)
    jax.block_until_ready(out)
    assert out.dtype == jnp.bfloat16
    _check(out, a, b, "bf16", tol=2e-2)

    print("KERNEL_OK")
</pallas_src>

<mosaic_0001>
module attributes {stable_mosaic.version = 11 : i64} {
  func.func @_mm_kernel_acc_in_output(%arg0: i32, %arg1: i32, %arg2: i32, %arg3: memref<64x256xf32, #tpu.memory_space<vmem>>, %arg4: memref<256x128xf32, #tpu.memory_space<vmem>>, %arg5: memref<64x128xf32, #tpu.memory_space<vmem>>) attributes {dimension_semantics = [#tpu.dimension_semantics<parallel>, #tpu.dimension_semantics<parallel>, #tpu.dimension_semantics<arbitrary>], iteration_bounds = array<i64: 2, 1, 1>, scalar_prefetch = 0 : i64, scratch_operands = 0 : i64, tpu.core_type = #tpu.core_type<tc>, window_params = [{transform_indices = @transform_0, window_bounds = array<i64: 64, 256>}, {transform_indices = @transform_1, window_bounds = array<i64: 256, 128>}, {transform_indices = @transform_2, window_bounds = array<i64: 64, 128>}]} {
    %c0 = arith.constant 0 : index
    %c0_0 = arith.constant 0 : index
    %0 = vector.load %arg3[%c0, %c0_0] : memref<64x256xf32, #tpu.memory_space<vmem>>, vector<64x256xf32>
    %c0_1 = arith.constant 0 : index
    %c0_2 = arith.constant 0 : index
    %1 = vector.load %arg4[%c0_1, %c0_2] : memref<256x128xf32, #tpu.memory_space<vmem>>, vector<256x128xf32>
    %cst = arith.constant dense<0.000000e+00> : vector<64x128xf32>
    %2 = tpu.matmul %0, %1, %cst {dimension_numbers = #tpu.dot_dimension_numbers<[1], [0], [0], [1], [0, 0, 1, 1], [], []>} : vector<64x256xf32>, vector<256x128xf32>, vector<64x128xf32> -> vector<64x128xf32>
    %c0_i32 = arith.constant 0 : i32
    %3 = arith.cmpi eq, %arg2, %c0_i32 : i32
    %4 = arith.extui %3 : i1 to i32
    %c0_i32_3 = arith.constant 0 : i32
    %5 = arith.cmpi ne, %4, %c0_i32_3 : i32
    scf.if %5 {
      %c0_6 = arith.constant 0 : index
      %c0_7 = arith.constant 0 : index
      %9 = vector.load %arg5[%c0_6, %c0_7] : memref<64x128xf32, #tpu.memory_space<vmem>>, vector<64x128xf32>
      tpu.vector_store %arg5[%c0_6, %c0_7], %2 {strides = array<i32>} : memref<64x128xf32, #tpu.memory_space<vmem>>, vector<64x128xf32>,
    } else {
    }
    %c0_i32_4 = arith.constant 0 : i32
    %6 = arith.cmpi sgt, %arg2, %c0_i32_4 : i32
    %7 = arith.extui %6 : i1 to i32
    %c0_i32_5 = arith.constant 0 : i32
    %8 = arith.cmpi ne, %7, %c0_i32_5 : i32
    scf.if %8 {
      %c0_6 = arith.constant 0 : index
      %c0_7 = arith.constant 0 : index
      %9 = vector.load %arg5[%c0_6, %c0_7] : memref<64x128xf32, #tpu.memory_space<vmem>>, vector<64x128xf32>
      %10 = arith.addf %9, %2 : vector<64x128xf32>
      %c0_8 = arith.constant 0 : index
      %c0_9 = arith.constant 0 : index
      %11 = vector.load %arg5[%c0_8, %c0_9] : memref<64x128xf32, #tpu.memory_space<vmem>>, vector<64x128xf32>
      tpu.vector_store %arg5[%c0_8, %c0_9], %10 {strides = array<i32>} : memref<64x128xf32, #tpu.memory_space<vmem>>, vector<64x128xf32>,
    } else {
    }
    return
  }
  func.func @transform_0(%arg0: i32, %arg1: i32, %arg2: i32) -> (i32, i32) {
    %c0_i32 = arith.constant 0 : i32
    return %arg0, %arg2 : i32, i32
  }
  func.func @transform_1(%arg0: i32, %arg1: i32, %arg2: i32) -> (i32, i32) {
    %c0_i32 = arith.constant 0 : i32
    return %arg2, %arg1 : i32, i32
  }
  func.func @transform_2(%arg0: i32, %arg1: i32, %arg2: i32) -> (i32, i32) {
    %c0_i32 = arith.constant 0 : i32
    return %arg0, %arg1 : i32, i32
  }
}

</mosaic_0001>

<bundles_post_ra>
// kernel: mm.1
= control target key start
LH: loop header
LB: loop body
LE: loop exit
PB: predicated region body
PF: predicated region fallthrough
CT: control target
= control target key end

     0   :  { %7 = vsyncpa [#allocation3], 0  ;;  %s1081_s0 = inlined_call_operand.hbm [shape: f32[128,256], index: 0, kind: input, shape index: {}]   ;;  %s1082_s1 = inlined_call_operand.hbm [shape: f32[256,128], index: 1, kind: input, shape index: {}]   ;;  %s1083_s2 = inlined_call_operand.hbm [shape: f32[128,128], index: 2, kind: output, shape index: {}]  }
   0x1   :  { %9 = vsyncpa [#allocation3 + $0x1], 0 }
   0x2   :  { %10 = vsyncpa [#allocation6], 0 }
   0x3   :  { %11 = vsyncpa [#allocation4], 0 }
   0x4   :  { %13 = vsyncpa [#allocation4 + $0x1], 0  ;;  %s881_s9 = smov 0   ;;  %s883_s10 = smov 0  }
   0x5   :  { %s885_s11 = smov 0   ;;  %s887_s12 = smov 0  }
   0x6   :  { %s889_s13 = smov 0   ;;  %s891_s14 = smov 0  }
   0x7 LB: > { %s529_s15 = sadd.s32 4294967295, %s855_s14   ;;  %s530_s16 = sadd.s32 4294967294, %s855_s14   ;;  %s855_s14 = sphi %s891_s14, %s19_s14   ;;  %s851_s13 = sphi %s889_s13, %s1101_s13   ;;  %s847_s12 = sphi %s887_s12, %s1100_s12   ;;  %s843_s11 = sphi %s885_s11, %s1099_s11   ;;  %s839_s10 = sphi %s883_s10, %s1098_s10   ;;  %s835_s9 = sphi %s881_s9, %s1097_s9  }
   0x8   : > { %p60_p0 = scmp.ne.s32.totalorder %s839_s10, %s835_s9  ;;  %p915_p1 = scmp.eq.s32.totalorder %s529_s15, 0 }
   0x9   : > { %p919_p2 = scmp.eq.s32.totalorder %s529_s15, 1  ;;  %p120_p3 = scmp.eq.s32.totalorder %s530_s16, 1 }
   0xa   : > { %p925_p4 = por %p915_p1, %p60_p0  ;;  %p531_p5 = scmp.ge.s32.totalorder %s855_s14, 1 }
   0xb   : > { %p930_p6 = por %p120_p3, %p60_p0  ;;  %p127_p7 = scmp.lt.s32.totalorder %s855_s14, 3 }
   0xc   : > { %s1087_s19 = scalar_select %p925_p4, 1, 0 }
   0xd   : > { %s1088_s20 = scalar_select %p930_p6, 1, 0 }
   0xe   : > { %p935_p8 = pnand %p531_p5, %p127_p7  ;;  %s857_s22 = smov [#allocation5]  }
   0xf   : > { %s143_s23 = sshll.u32 %s857_s22, 4  ;;  %s38_s25 = sadd.s32 1, %s851_s13  ;;  %s144_s23 = int_to_ptr.vmem [resolvable:$true] %s143_s23 }
  0x10   : > { %p646_p9 = pneg %p935_p8  ;;  %s728_s26 = scalar_lea.vmem %s144_s23, 4096 }
  0x11   : > { %p729_p13 = scmp.ne.s32.totalorder %s144_s23, %s728_s26  ;;  %p736_p5 = scmp.lt.s32.totalorder %s144_s23, %s144_s23 }
  0x12   : > { %p944_p11 = pnand %p646_p9, %p915_p1  ;;  %p737_p7 = scmp.lt.s32.totalorder %s728_s26, %s728_s26 }
  0x14   : > { %p719_p12 = pneg %p944_p11  ;;  %p738_p6 = por %p737_p7, %p736_p5 }
  0x16   : > { %p731_p0 = pnand %p729_p13, %p719_p12 }
  0x18   : > { %p732_p3 = pneg %p731_p0 }
  0x1a   : > { %p739_p4 = pnand %p738_p6, %p732_p3 }
  0x1c   : > { %742 = shalt.err (!%p739_p4)
}
  0x1d   : > { %s858_s27 = smov 128   ;;  %s859_s28 = smov 8  }
  0x1e   : > { %649 = dma.hbm_to_vmem [thread:$0]  (!%p944_p11), %s1082_s1, 4096, %s144_s23, [#allocation6], %s858_s27, %s858_s27, %s859_s28  }
  0x1f   : > { %p40_p6 = scmp.ge.s32.totalorder %s38_s25, 2  ;;  %s47_s3 = sadd.s32 1, %s843_s11 }
  0x20   : > { %p54_p4 = scmp.ne.s32.totalorder %s843_s11, %s839_s10  ;;  %p55_p9 = scmp.eq.s32.totalorder %s855_s14, 0 }
  0x21   : > { %s1103_s25 = smov (%p40_p6, %s38_s25), 0  ;;  %p659_p0 = scmp.lt.s32.totalorder %s855_s14, 2 }
  0x22   : > { %p962_p12 = por %p55_p9, %p54_p4  ;;  %p968_p13 = por %p919_p2, %p54_p4 }
  0x23   : > { %s42_s6 = ssub.s32 %s851_s13, %s1103_s25  ;;  %s157_s7 = sand.u32 1, %s843_s11  }
  0x24   : > { %p45_p11 = scmp.eq.s32.totalorder %s42_s6, 0  ;;  %s534_s8 = sshll.u32 %s157_s7, 7 }
  0x25   : > { %s548_s16 = sshll.u32 %s851_s13, 11  ;;  %s161_s26 = scalar_lea.vmem [#allocation2], %s534_s8 }
  0x26   : > { %s977_s15 = scalar_select %p45_p11, %s843_s11, %s47_s3  }
  0x27   : > { %s170_s24 = scalar_lea.hbm %s1081_s0, %s548_s16  ;;  %s171_s27 = sshll.u32 %s161_s26, 4  ;;  %s172_s27 = int_to_ptr.vmem [resolvable:$true] %s171_s27 }
  0x28   : > { %p985_p2 = pnand %p659_p0, %p962_p12  ;;  %s158_s28 = scalar_lea.sflag [#allocation3], %s157_s7 }
  0x29   : > { %s756_s29 = scalar_lea.vmem %s172_s27, 2048  ;;  %s860_s30 = smov [#allocation2]  }
  0x2a   : > { %p745_p3 = pneg %p985_p2  ;;  %p757_p5 = scmp.ne.s32.totalorder %s172_s27, %s756_s29 }
  0x2b   : > { %s761_s3 = sshll.u32 %s860_s30, 4  ;;  %s762_s3 = int_to_ptr.vmem [resolvable:$false] %s761_s3 }
  0x2c   : > { %p759_p7 = pnand %p757_p5, %p745_p3  ;;  %s763_s6 = scalar_lea.vmem %s762_s3, 4096 }
  0x2d   : > { %p764_p4 = scmp.lt.s32.totalorder %s172_s27, %s762_s3  ;;  %p765_p9 = scmp.lt.s32.totalorder %s763_s6, %s756_s29 }
  0x2e   : > { %p760_p6 = pneg %p759_p7 }
  0x2f   : > { %p766_p11 = por %p765_p9, %p764_p4 }
  0x31   : > { %p767_p10 = pnand %p766_p11, %p760_p6 }
  0x33   : > { %770 = shalt.err (!%p767_p10)
}
  0x34   : > { %s861_s4 = smov 256   ;;  %s862_s8 = smov 16  }
  0x35   : > { %653 = dma.hbm_to_vmem [thread:$0]  (!%p985_p2), %s170_s24, 2048, %s172_s27, %s158_s28, %s861_s4, %s861_s4, %s862_s8  }
  0x36   : > { %183 = sbr.rel (%p935_p8) target bundleno = 319 (0x13f), region = 28  ;;  %s996_s7 = sand.u32 (!%p935_p8), 1, %s839_s10  }
  0x37   : > { %s539_s16 = sshll.u32 (!%p935_p8), %s996_s7, 7  ;;  %s186_s22 = scalar_lea.sflag (!%p935_p8), [#allocation3], %s996_s7 }
  0x38   : > { %s1000_s23 = scalar_lea.vmem (!%p935_p8), [#allocation2], %s539_s16  ;;  %p1094_p12 = scmp.ne.s32.totalorder (!%p935_p8), %s1087_s19, 0 }
  0x3b   : > { %822 = dma.done.wait (%p1094_p12), %s186_s22, 2048  }
  0x3c   : > { %824 = vsyncadd (%p1094_p12), %s186_s22, 4294965248 }
  0x3d   : > { %826 = dma.done.wait (%p915_p1), [#allocation6], 4096  }
  0x3e   : > { %828 = vsyncadd (%p915_p1), [#allocation6], 4294963200  ;;  %v265_v0 = vld [vmem:[#allocation5 + $0xf8] sm:$0xff]  ;;  %v264_v2 = vld [vmem:[#allocation5 + $0xf0] sm:$0xff]  ;;  %s541_s17 = sshll.u32 %s996_s7, 6  ;;  %s549_s24 = sshll.u32 %s847_s12, 10 }
  0x3f   : > { %v249_v1 = vld [vmem:[#allocation5 + $0x78] sm:$0xff]  ;;  %550 = vmatprep.subr.mxu0 %v265_v0  ;;  %606 = vmatprep.subr.mxu1 %v265_v0  ;;  %v248_v3 = vld [vmem:[#allocation5 + $0x70] sm:$0xff]  ;;  %v263_v4 = vld [vmem:[#allocation5 + $0xe8] sm:$0xff]  ;;  %s213_s19 = scalar_lea.vmem [#allocation7], %s541_s17  ;;  %s1033_s18 = scalar_lea.hbm %s1083_s2, %s549_s24 }
  0x40   : > { %551 = vmatpush3.msra.mxu0 %v249_v1  ;;  %622 = vmatpush3.msra.mxu1 %v249_v1  ;;  %v247_v5 = vld [vmem:[#allocation5 + $0x68] sm:$0xff]  ;;  %v262_v6 = vld [vmem:[#allocation5 + $0xe0] sm:$0xff]  ;;  %v261_v8 = vld [vmem:[#allocation5 + $0xd8] sm:$0xff]  ;;  %s426_s21 = sshll.u32 %s213_s19, 4  ;;  %s412_s12 = scalar_lea.sflag [#allocation4], %s996_s7  ;;  %s1028_s21 = int_to_ptr.vmem [resolvable:$true] %s426_s21 }
  0x41   : > { %552 = vmatprep.subr.mxu0 %v264_v2  ;;  %607 = vmatprep.subr.mxu1 %v264_v2  ;;  %v246_v7 = vld [vmem:[#allocation5 + $0x60] sm:$0xff]  ;;  %v245_v9 = vld [vmem:[#allocation5 + $0x58] sm:$0xff]  ;;  %v260_v10 = vld [vmem:[#allocation5 + $0xd0] sm:$0xff]  ;;  %s771_s28 = scalar_lea.vmem %s1028_s21, 1024  ;;  %s863_s29 = smov [#allocation7]  }
  0x42   : > { %553 = vmatpush3.msra.mxu0 %v248_v3  ;;  %623 = vmatpush3.msra.mxu1 %v248_v3  ;;  %v244_v11 = vld [vmem:[#allocation5 + $0x50] sm:$0xff]  ;;  %v259_v12 = vld [vmem:[#allocation5 + $0xc8] sm:$0xff]  ;;  %v258_v14 = vld [vmem:[#allocation5 + $0xc0] sm:$0xff]  ;;  %p772_p1 = scmp.ne.s32.totalorder %s1028_s21, %s771_s28  ;;  %s775_s30 = sshll.u32 %s863_s29, 4  ;;  %s776_s30 = int_to_ptr.vmem [resolvable:$false] %s775_s30 }
  0x43   : > { %554 = vmatprep.subr.mxu0 %v263_v4  ;;  %608 = vmatprep.subr.mxu1 %v263_v4  ;;  %v243_v13 = vld [vmem:[#allocation5 + $0x48] sm:$0xff]  ;;  %v242_v15 = vld [vmem:[#allocation5 + $0x40] sm:$0xff]  ;;  %v257_v16 = vld [vmem:[#allocation5 + $0xb8] sm:$0xff]  ;;  %s777_s3 = scalar_lea.vmem %s776_s30, 2048  ;;  %p778_p0 = scmp.lt.s32.totalorder %s1028_s21, %s776_s30 }
  0x44   : > { %555 = vmatpush3.msra.mxu0 %v247_v5  ;;  %624 = vmatpush3.msra.mxu1 %v247_v5  ;;  %v241_v17 = vld [vmem:[#allocation5 + $0x38] sm:$0xff]  ;;  %v256_v18 = vld [vmem:[#allocation5 + $0xb0] sm:$0xff]  ;;  %v255_v20 = vld [vmem:[#allocation5 + $0xa8] sm:$0xff]  ;;  %p773_p8 = pnand %p772_p1, %p968_p13  ;;  %p779_p2 = scmp.lt.s32.totalorder %s777_s3, %s771_s28 }
  0x45   : > { %556 = vmatprep.subr.mxu0 %v262_v6  ;;  %609 = vmatprep.subr.mxu1 %v262_v6  ;;  %v240_v19 = vld [vmem:[#allocation5 + $0x30] sm:$0xff]  ;;  %v239_v21 = vld [vmem:[#allocation5 + $0x28] sm:$0xff]  ;;  %v254_v22 = vld [vmem:[#allocation5 + $0xa0] sm:$0xff] }
  0x46   : > { %557 = vmatpush3.msra.mxu0 %v246_v7  ;;  %625 = vmatpush3.msra.mxu1 %v246_v7  ;;  %v238_v23 = vld [vmem:[#allocation5 + $0x20] sm:$0xff]  ;;  %v253_v24 = vld [vmem:[#allocation5 + $0x98] sm:$0xff]  ;;  %v252_v26 = vld [vmem:[#allocation5 + $0x90] sm:$0xff]  ;;  %p774_p10 = pneg %p773_p8  ;;  %p780_p3 = por %p779_p2, %p778_p0 }
  0x47   : > { %558 = vmatprep.subr.mxu0 %v261_v8  ;;  %610 = vmatprep.subr.mxu1 %v261_v8  ;;  %v237_v25 = vld [vmem:[#allocation5 + $0x18] sm:$0xff]  ;;  %v236_v27 = vld [vmem:[#allocation5 + $0x10] sm:$0xff]  ;;  %v251_v28 = vld [vmem:[#allocation5 + $0x88] sm:$0xff] }
  0x48   : > { %559 = vmatpush3.msra.mxu0 %v245_v9  ;;  %626 = vmatpush3.msra.mxu1 %v245_v9  ;;  %v235_v29 = vld [vmem:[#allocation5 + $0x8] sm:$0xff]  ;;  %v250_v30 = vld [vmem:[#allocation5 + $0x80] sm:$0xff]  ;;  %v221_v36 = vld [vmem:[%s1000_s23 + $0x18] sm:$0xff]  ;;  %p781_p5 = pnand %p780_p3, %p774_p10 }
  0x49   : > { %560 = vmatprep.subr.mxu0 %v260_v10  ;;  %611 = vmatprep.subr.mxu1 %v260_v10  ;;  %v234_v31 = vld [vmem:[#allocation5] sm:$0xff]  ;;  %v219_v32 = vld [vmem:[%s1000_s23 + $0x8] sm:$0xff]  ;;  %v229_v37 = vld [vmem:[%s1000_s23 + $0x58] sm:$0xff] }
  0x4a   : > { %561 = vmatpush3.msra.mxu0 %v244_v11  ;;  %627 = vmatpush3.msra.mxu1 %v244_v11  ;;  %v227_v33 = vld [vmem:[%s1000_s23 + $0x48] sm:$0xff]  ;;  %v218_v34 = vld [vmem:[%s1000_s23] sm:$0xff]  ;;  %v220_v38 = vld [vmem:[%s1000_s23 + $0x10] sm:$0xff] }
  0x4b   : > { %562 = vmatprep.subr.mxu0 %v259_v12  ;;  %612 = vmatprep.subr.mxu1 %v259_v12  ;;  %v226_v35 = vld [vmem:[%s1000_s23 + $0x40] sm:$0xff]  ;;  %v228_v39 = vld [vmem:[%s1000_s23 + $0x50] sm:$0xff]  ;;  %v223_v40 = vld [vmem:[%s1000_s23 + $0x28] sm:$0xff] }
  0x4c   : > { %563 = vmatpush3.msra.mxu0 %v243_v13  ;;  %628 = vmatpush3.msra.mxu1 %v243_v13  ;;  %v231_v41 = vld [vmem:[%s1000_s23 + $0x68] sm:$0xff]  ;;  %v222_v42 = vld [vmem:[%s1000_s23 + $0x20] sm:$0xff]  ;;  %v225_v44 = vld [vmem:[%s1000_s23 + $0x38] sm:$0xff] }
  0x4d   : > { %564 = vmatprep.subr.mxu0 %v258_v14  ;;  %613 = vmatprep.subr.mxu1 %v258_v14  ;;  %v230_v43 = vld [vmem:[%s1000_s23 + $0x60] sm:$0xff]  ;;  %v233_v45 = vld [vmem:[%s1000_s23 + $0x78] sm:$0xff]  ;;  %v224_v46 = vld [vmem:[%s1000_s23 + $0x30] sm:$0xff] }
  0x4e   : > { %565 = vmatpush3.msra.mxu0 %v242_v15  ;;  %629 = vmatpush3.msra.mxu1 %v242_v15  ;;  %v232_v47 = vld [vmem:[%s1000_s23 + $0x70] sm:$0xff] }
  0x4f   : > { %566 = vmatprep.subr.mxu0 %v257_v16  ;;  %614 = vmatprep.subr.mxu1 %v257_v16 }
  0x50   : > { %567 = vmatpush3.msra.mxu0 %v241_v17  ;;  %630 = vmatpush3.msra.mxu1 %v241_v17 }
  0x51   : > { %568 = vmatprep.subr.mxu0 %v256_v18  ;;  %615 = vmatprep.subr.mxu1 %v256_v18 }
  0x52   : > { %569 = vmatpush3.msra.mxu0 %v240_v19  ;;  %631 = vmatpush3.msra.mxu1 %v240_v19 }
  0x53   : > { %570 = vmatprep.subr.mxu0 %v255_v20  ;;  %616 = vmatprep.subr.mxu1 %v255_v20 }
  0x54   : > { %571 = vmatpush3.msra.mxu0 %v239_v21  ;;  %632 = vmatpush3.msra.mxu1 %v239_v21 }
  0x55   : > { %572 = vmatprep.subr.mxu0 %v254_v22  ;;  %617 = vmatprep.subr.mxu1 %v254_v22 }
  0x56   : > { %573 = vmatpush3.msra.mxu0 %v238_v23  ;;  %633 = vmatpush3.msra.mxu1 %v238_v23 }
  0x57   : > { %574 = vmatprep.subr.mxu0 %v253_v24  ;;  %618 = vmatprep.subr.mxu1 %v253_v24 }
  0x58   : > { %575 = vmatpush3.msra.mxu0 %v237_v25  ;;  %634 = vmatpush3.msra.mxu1 %v237_v25 }
  0x59   : > { %576 = vmatprep.subr.mxu0 %v252_v26  ;;  %619 = vmatprep.subr.mxu1 %v252_v26 }
  0x5a   : > { %577 = vmatpush3.msra.mxu0 %v236_v27  ;;  %635 = vmatpush3.msra.mxu1 %v236_v27 }
  0x5b   : > { %578 = vmatprep.subr.mxu0 %v251_v28  ;;  %620 = vmatprep.subr.mxu1 %v251_v28 }
  0x5c   : > { %579 = vmatpush3.msra.mxu0 %v235_v29  ;;  %636 = vmatpush3.msra.mxu1 %v235_v29 }
  0x5d   : > { %580 = vmatprep.subr.mxu0 %v250_v30  ;;  %621 = vmatprep.subr.mxu1 %v250_v30 }
  0x5e   : > { %581 = vmatpush3.msra.mxu0 %v234_v31  ;;  %637 = vmatpush3.msra.mxu1 %v234_v31 }
  0x5f   : > { %330 = vmatprep.mubr.f32.mxu0 %v219_v32  ;;  %350 = vmatprep.mubr.f32.mxu1 %v227_v33 }
  0x60   : > { %331 = vmatmul.mubr.f32.vlgmr.msra.gmra.mxu0 %v218_v34  ;;  %351 = vmatmul.mubr.f32.vlgmr.msra.gmra.mxu1 %v226_v35 }
  0x61   : > { %335 = vmatprep.mubr.f32.mxu0 %v221_v36  ;;  %355 = vmatprep.mubr.f32.mxu1 %v229_v37 }
  0x64   : > { %336 = vmatmul.mubr.f32.gmra.mxu0 %v220_v38  ;;  %356 = vmatmul.mubr.f32.gmra.mxu1 %v228_v39 }
  0x65   : > { %340 = vmatprep.mubr.f32.mxu0 %v223_v40  ;;  %360 = vmatprep.mubr.f32.mxu1 %v231_v41 }
  0x68   : > { %341 = vmatmul.mubr.f32.gmra.mxu0 %v222_v42  ;;  %361 = vmatmul.mubr.f32.gmra.mxu1 %v230_v43 }
  0x69   : > { %345 = vmatprep.mubr.f32.mxu0 %v225_v44  ;;  %365 = vmatprep.mubr.f32.mxu1 %v233_v45 }
  0x6c   : > { %346 = vmatmul.mubr.f32.gmra.mxu0 %v224_v46  ;;  %366 = vmatmul.mubr.f32.gmra.mxu1 %v232_v47 }
 0x120   : > { %v582_v48 = vpop.f32.mrf.mxu0  ;;  %v594_v49 = vpop.f32.mrf.mxu1 }
 0x122   : > { %v583_v50 = vpop.f32.mrf.mxu0  ;;  %v595_v51 = vpop.f32.mrf.mxu1 }
 0x123   : > { %v584_v52 = vadd.f32 %v583_v50, %v582_v48  ;;  %v596_v53 = vadd.f32 %v595_v51, %v594_v49 }
 0x124   : > { %v585_v54 = vpop.f32.mrf.mxu0  ;;  %v597_v55 = vpop.f32.mrf.mxu1 }
 0x125   : > { %375 = vst [vmem:[%s213_s19] sm:$0xff] %v584_v52  ;;  %379 = vst [vmem:[%s213_s19 + $0x20] sm:$0xff] %v596_v53 }
 0x126   : > { %v586_v56 = vpop.f32.mrf.mxu0  ;;  %v598_v57 = vpop.f32.mrf.mxu1 }
 0x127   : > { %v587_v58 = vadd.f32 %v586_v56, %v585_v54  ;;  %v599_v59 = vadd.f32 %v598_v57, %v597_v55 }
 0x128   : > { %v588_v60 = vpop.f32.mrf.mxu0  ;;  %v600_v61 = vpop.f32.mrf.mxu1 }
 0x129   : > { %376 = vst [vmem:[%s213_s19 + $0x8] sm:$0xff] %v587_v58  ;;  %380 = vst [vmem:[%s213_s19 + $0x28] sm:$0xff] %v599_v59 }
 0x12a   : > { %v589_v62 = vpop.f32.mrf.mxu0  ;;  %v601_v63 = vpop.f32.mrf.mxu1 }
 0x12b   : > { %v590_v0 = vadd.f32 %v589_v62, %v588_v60  ;;  %v602_v1 = vadd.f32 %v601_v63, %v600_v61 }
 0x12c   : > { %v591_v2 = vpop.f32.mrf.mxu0  ;;  %v603_v3 = vpop.f32.mrf.mxu1 }
 0x12d   : > { %377 = vst [vmem:[%s213_s19 + $0x10] sm:$0xff] %v590_v0  ;;  %381 = vst [vmem:[%s213_s19 + $0x30] sm:$0xff] %v602_v1 }
 0x12e   : > { %v592_v4 = vpop.f32.mrf.mxu0  ;;  %v604_v5 = vpop.f32.mrf.mxu1 }
 0x12f   : > { %v593_v6 = vadd.f32 %v592_v4, %v591_v2  ;;  %v605_v7 = vadd.f32 %v604_v5, %v603_v3 }
 0x131   : > { %378 = vst [vmem:[%s213_s19 + $0x18] sm:$0xff] %v593_v6  ;;  %382 = vst [vmem:[%s213_s19 + $0x38] sm:$0xff] %v605_v7 }
 0x132   : > { %784 = shalt.err (!%p781_p5)
}
 0x133   : > { %s785_s6 = scalar_lea.hbm %s1033_s18, 1024  ;;  %s789_s16 = scalar_lea.hbm %s1083_s2, 2048 }
 0x134   : > { %p786_p7 = scmp.ne.s32.totalorder %s1033_s18, %s785_s6  ;;  %p790_p9 = scmp.lt.s32.totalorder %s1033_s18, %s1083_s2 }
 0x135   : > { %p791_p11 = scmp.lt.s32.totalorder %s789_s16, %s785_s6 }
 0x136   : > { %p787_p6 = pnand %p786_p7, %p968_p13 }
 0x137   : > { %p792_p12 = por %p791_p11, %p790_p9 }
 0x138   : > { %p788_p4 = pneg %p787_p6 }
 0x13a   : > { %p793_p1 = pnand %p792_p12, %p788_p4 }
 0x13c   : > { %796 = shalt.err (!%p793_p1)
}
 0x13d   : > { %s864_s17 = smov 128   ;;  %s865_s19 = smov 8  }
 0x13e   : > { %644 = dma.vmem_to_hbm [thread:$0]  (%p968_p13), %s1028_s21, 1024, %s1033_s18, %s412_s12, %s864_s17, %s864_s17, %s865_s19  }
 0x13f PF: > { %s441_s24 = sand.u32 1, %s835_s9   ;;  %p1095_p8 = scmp.ne.s32.totalorder %s1088_s20, 0 }
 0x140   : > { %p1096_p10 = scmp.ge.s32.totalorder %s855_s14, 2  ;;  %s442_s26 = scalar_lea.sflag [#allocation4], %s441_s24 }
 0x142   : > { %p655_p0 = pnand %p1096_p10, %p1095_p8 }
 0x144   : > { %p656_p2 = pneg %p655_p0 }
 0x146   : > { %830 = dma.done.wait (%p656_p2), %s442_s26, 1024  }
 0x147   : > { %832 = vsyncadd (%p656_p2), %s442_s26, 4294966272  ;;  %s19_s14 = sadd.s32 1, %s855_s14   ;;  %s1097_s9 = smov %s839_s10 }
 0x148   : > { %p16_p3 = scmp.ge.s32.totalorder %s19_s14, 4   ;;  %s1098_s10 = smov %s843_s11 }
 0x149   : > { %s1099_s11 = smov %s977_s15  ;;  %s1100_s12 = smov %s851_s13 }
 0x14a   : > { %s1101_s13 = smov %s1103_s25  ;;  %18 = sbr.rel (!%p16_p3) target bundleno = 7 (0x7), region = 86 }
 0x14f   :  { %447 = vsyncpa [#allocation3], 1 }
 0x150   :  { %449 = vsyncpa [#allocation3 + $0x1], 1 }
 0x151   :  { %450 = vsyncpa [#allocation6], 1 }
 0x152   :  { %451 = vsyncpa [#allocation4], 1 }
 0x153   :  { %453 = vsyncpa [#allocation4 + $0x1], 1 }

</bundles_post_ra>
